<compile_context>
chip_gen: v7x
topology: tpu7x:2x2x1
jax: 0.10.0
libtpu: 0.0.40
codegen_flags: <defaults>
</compile_context>

<pallas_src>
import functools

import jax
import jax.numpy as jnp
from jax.experimental import pallas as pl
from jax.experimental.pallas import tpu as pltpu


def _round_up(x, m):
    return ((x + m - 1) // m) * m


def _autorec_kernel(x_ref, we_ref, be_ref, wd_ref, bd_ref, o_ref,
                    acc_ref, h_ref, *, nk):
    """Fused AutoRec forward for one batch tile (phase axis = program_id(1))."""
    t = pl.program_id(1)

    @pl.when(t < nk)
    def _encoder():
        @pl.when(t == 0)
        def _():
            acc_ref[...] = jnp.zeros_like(acc_ref)

        acc_ref[...] += jnp.dot(x_ref[...], we_ref[...],
                                preferred_element_type=jnp.float32)

        @pl.when(t == nk - 1)
        def _():
            # Bias add + single cast to the matmul dtype; the hidden activation
            # is then reused (from VMEM) for every decoder output tile.
            h_ref[...] = (acc_ref[...] + be_ref[...]).astype(h_ref.dtype)
            # TODO(synk): training-mode dropout on the hidden layer not implemented.

    @pl.when(t >= nk)
    def _decoder():
        pred = jnp.dot(h_ref[...], wd_ref[...],
                       preferred_element_type=jnp.float32)
        o_ref[...] = (pred + bd_ref[...]).astype(o_ref.dtype)
        # TODO(synk): training-mode `pred * sign(x)` masking not implemented.


def prepare_autorec_params(w_enc, b_enc, w_dec, b_dec, *,
                           tk=512, tn=2048,
                           compute_dtype=jnp.bfloat16,
                           decoder_resident_bytes=24 << 20):
    """One-time parameter prep: transpose, zero-pad, cast matmul operands."""
    num_hidden, num_users = w_enc.shape
    itemsize = jnp.dtype(compute_dtype).itemsize

    h_pad = _round_up(num_hidden, 128)

    # Encoder contraction chunking (bounded VMEM for any num_users).
    tk = min(tk, _round_up(num_users, 128))
    k_pad = _round_up(num_users, tk)

    # Decoder weight: keep it fully resident when small enough (read once per
    # batch tile with no per-tile streaming), else stream (h_pad, tn) tiles.
    full_n = _round_up(num_users, 128)
    if 2 * h_pad * full_n * itemsize <= decoder_resident_bytes:
        tn = full_n
    else:
        tn = min(tn, full_n)
    n_pad = _round_up(num_users, tn)

    we_t = jnp.zeros((k_pad, h_pad), compute_dtype)
    we_t = we_t.at[:num_users, :num_hidden].set(w_enc.T.astype(compute_dtype))
    wd_t = jnp.zeros((h_pad, n_pad), compute_dtype)
    wd_t = wd_t.at[:num_hidden, :num_users].set(w_dec.T.astype(compute_dtype))
    be = jnp.zeros((1, h_pad), jnp.float32).at[0, :num_hidden].set(
        b_enc.astype(jnp.float32))
    bd = jnp.zeros((1, n_pad), jnp.float32).at[0, :num_users].set(
        b_dec.astype(jnp.float32))

    return dict(we_t=we_t, be=be, wd_t=wd_t, bd=bd,
                num_users=num_users, num_hidden=num_hidden,
                tk=tk, k_pad=k_pad, tn=tn, n_pad=n_pad, h_pad=h_pad,
                compute_dtype=compute_dtype)


def autorec_forward(x, params, *, tb=512):
    """x: (B, num_users). Returns (B, num_users) in x.dtype (eval-mode forward)."""
    num_users = params["num_users"]
    tk, k_pad = params["tk"], params["k_pad"]
    tn, n_pad = params["tn"], params["n_pad"]
    h_pad = params["h_pad"]
    compute_dtype = params["compute_dtype"]
    out_dtype = x.dtype
    itemsize = jnp.dtype(compute_dtype).itemsize
    out_itemsize = jnp.dtype(out_dtype).itemsize

    B = x.shape[0]
    # bf16 packs 16 rows per sublane tile -> keep tb a multiple of 16 (8 for f32).
    tb_mult = 16 if itemsize < 4 else 8
    tb = max(tb_mult, min(tb, _round_up(B, tb_mult)))
    b_pad = _round_up(B, tb)
    # Small batches: make sure the "parallel" batch axis has >= 2 tiles so both
    # v7x TensorCores get work.
    if b_pad // tb < 2 and tb >= 2 * tb_mult:
        tb //= 2
        b_pad = _round_up(B, tb)
    nb = b_pad // tb
    nk = k_pad // tk
    nj = n_pad // tn

    # Pad + cast the activations once (zero padding is neutral for both matmuls).
    if b_pad == B and k_pad == num_users and x.dtype == compute_dtype:
        x_p = x
    else:
        x_p = jnp.zeros((b_pad, k_pad), compute_dtype)
        x_p = x_p.at[:B, :num_users].set(x.astype(compute_dtype))

    # VMEM budget from the actual tile footprint (+50% headroom), capped at
    # ~85% of this chip's physical VMEM (v5e/v6e: 128 MiB, v7x: 64 MiB).
    try:
        phys_vmem = int(pltpu.get_tpu_info().vmem_capacity_bytes)
    except Exception:  # pragma: no cover - conservative fallback
        phys_vmem = 64 << 20
    vmem_need = (
        2 * tb * tk * itemsize          # x chunk (double buffered)
        + 2 * tk * h_pad * itemsize     # encoder weight chunk
        + 2 * h_pad * tn * itemsize     # decoder weight tile
        + 2 * (h_pad + tn) * 4          # biases
        + 2 * tb * tn * out_itemsize    # output tile
        + tb * h_pad * (4 + itemsize)   # f32 accumulator + cast hidden scratch
        + 2 * tb * max(tn, h_pad) * 4   # in-kernel f32 intermediates
    )
    vmem_limit = min(max(int(1.5 * vmem_need), 16 << 20), int(0.85 * phys_vmem))

    flops = 2 * b_pad * k_pad * h_pad + 2 * b_pad * h_pad * n_pad
    bytes_accessed = (
        b_pad * k_pad * itemsize                 # x (read once)
        + nb * k_pad * h_pad * itemsize          # W_enc^T (re-read per batch tile)
        + nb * h_pad * n_pad * itemsize          # W_dec^T (re-read per batch tile)
        + nb * (h_pad + n_pad) * 4               # biases
        + b_pad * n_pad * out_itemsize)          # output

    nk_c = nk  # static, captured by index maps / kernel
    kernel = functools.partial(_autorec_kernel, nk=nk_c)

    out_p = pl.pallas_call(
        kernel,
        out_shape=jax.ShapeDtypeStruct((b_pad, n_pad), out_dtype),
        grid_spec=pltpu.PrefetchScalarGridSpec(
            num_scalar_prefetch=0,
            grid=(nb, nk + nj),
            in_specs=[
                # Encoder operands: streamed over K; pinned to their last chunk
                # during the decoder phase (no re-fetch).
                pl.BlockSpec((tb, tk),
                             lambda i, t: (i, jnp.minimum(t, nk_c - 1))),
                pl.BlockSpec((tk, h_pad),
                             lambda i, t: (jnp.minimum(t, nk_c - 1), 0)),
                pl.BlockSpec((1, h_pad), lambda i, t: (0, 0)),
                # Decoder operands: pinned to tile 0 during the encoder phase
                # (single prefetch that overlaps encoder MXU work), then streamed.
                pl.BlockSpec((h_pad, tn),
                             lambda i, t: (0, jnp.maximum(t - nk_c, 0))),
                pl.BlockSpec((1, tn),
                             lambda i, t: (0, jnp.maximum(t - nk_c, 0))),
            ],
            out_specs=pl.BlockSpec(
                (tb, tn), lambda i, t: (i, jnp.maximum(t - nk_c, 0))),
            scratch_shapes=[
                pltpu.VMEM((tb, h_pad), jnp.float32),     # encoder f32 accumulator
                pltpu.VMEM((tb, h_pad), compute_dtype),   # hidden (cast once)
            ],
        ),
        compiler_params=pltpu.CompilerParams(
            dimension_semantics=("parallel", "arbitrary"),
            vmem_limit_bytes=vmem_limit,
        ),
        cost_estimate=pl.CostEstimate(
            flops=flops, transcendentals=0, bytes_accessed=bytes_accessed),
    )(x_p, params["we_t"], params["be"], params["wd_t"], params["bd"])

    return out_p[:B, :num_users]


if __name__ == "__main__":
    # Small, kernel-friendly shapes consistent with AutoRec(num_hidden, num_users).
    batch = 24
    num_users = 384
    num_hidden = 96

    key = jax.random.PRNGKey(0)
    k_x, k_we, k_be, k_wd, k_bd = jax.random.split(key, 5)

    # Mirror the module's init: weights ~ Normal(0, 0.01); biases keep the
    # nn.Linear default Uniform(-1/sqrt(fan_in), 1/sqrt(fan_in)).
    w_enc = 0.01 * jax.random.normal(k_we, (num_hidden, num_users), jnp.float32)
    w_dec = 0.01 * jax.random.normal(k_wd, (num_users, num_hidden), jnp.float32)
    b_enc = jax.random.uniform(
        k_be, (num_hidden,), jnp.float32,
        minval=-1.0 / jnp.sqrt(num_users), maxval=1.0 / jnp.sqrt(num_users))
    b_dec = jax.random.uniform(
        k_bd, (num_users,), jnp.float32,
        minval=-1.0 / jnp.sqrt(num_hidden), maxval=1.0 / jnp.sqrt(num_hidden))

    x = jax.random.normal(k_x, (batch, num_users), jnp.float32)

    # Reference (eval mode: dropout is identity).
    ref = (x @ w_enc.T + b_enc) @ w_dec.T + b_dec

    # 1) f32 path, small tiles, forced decoder streaming -> exercises the
    #    multi-chunk encoder (nk=3), multi-tile decoder (nj=3), multi batch
    #    tile (nb=3) grid with tight tolerance.
    params_f32 = prepare_autorec_params(
        w_enc, b_enc, w_dec, b_dec,
        tk=128, tn=128, compute_dtype=jnp.float32, decoder_resident_bytes=0)
    out_f32 = jax.block_until_ready(autorec_forward(x, params_f32, tb=8))
    assert out_f32.shape == (batch, num_users)
    assert jnp.allclose(out_f32, ref, atol=1e-4, rtol=1e-4)

    # 2) Default fast path: bf16 operands, f32 accumulation, resident decoder
    #    weight, batch split across >=2 tiles.
    params_bf16 = prepare_autorec_params(w_enc, b_enc, w_dec, b_dec)
    out_bf16 = jax.block_until_ready(autorec_forward(x, params_bf16))
    assert out_bf16.shape == (batch, num_users)
    assert jnp.allclose(out_bf16, ref, atol=2e-2, rtol=2e-2)

    # 3) Ragged batch (padding / slicing path).
    x_ragged = x[:5]
    out_ragged = jax.block_until_ready(autorec_forward(x_ragged, params_bf16))
    assert out_ragged.shape == (5, num_users)
    assert jnp.allclose(out_ragged, ref[:5], atol=2e-2, rtol=2e-2)

    print("KERNEL_OK")
</pallas_src>

<mosaic_0001>
module attributes {stable_mosaic.version = 11 : i64} {
  func.func @_autorec_kernel(%arg0: i32, %arg1: i32, %arg2: memref<8x128xf32, #tpu.memory_space<vmem>>, %arg3: memref<128x128xf32, #tpu.memory_space<vmem>>, %arg4: memref<1x128xf32, #tpu.memory_space<vmem>>, %arg5: memref<128x128xf32, #tpu.memory_space<vmem>>, %arg6: memref<1x128xf32, #tpu.memory_space<vmem>>, %arg7: memref<8x128xf32, #tpu.memory_space<vmem>>, %arg8: memref<8x128xf32, #tpu.memory_space<vmem>>, %arg9: memref<8x128xf32, #tpu.memory_space<vmem>>) attributes {dimension_semantics = [#tpu.dimension_semantics<parallel>, #tpu.dimension_semantics<arbitrary>], iteration_bounds = array<i64: 3, 6>, scalar_prefetch = 0 : i64, scratch_operands = 2 : i64, tpu.core_type = #tpu.core_type<tc>, window_params = [{transform_indices = @transform_0, window_bounds = array<i64: 8, 128>}, {transform_indices = @transform_1, window_bounds = array<i64: 128, 128>}, {pipeline_mode = #tpu.pipeline_mode<synchronous>, transform_indices = @transform_2, window_bounds = array<i64: 1, 128>}, {transform_indices = @transform_3, window_bounds = array<i64: 128, 128>}, {transform_indices = @transform_4, window_bounds = array<i64: 1, 128>}, {transform_indices = @transform_5, window_bounds = array<i64: 8, 128>}]} {
    %c3_i32 = arith.constant 3 : i32
    %0 = arith.cmpi slt, %arg1, %c3_i32 : i32
    %1 = arith.extui %0 : i1 to i32
    %c0_i32 = arith.constant 0 : i32
    %2 = arith.cmpi ne, %1, %c0_i32 : i32
    scf.if %2 {
      %c0_i32_2 = arith.constant 0 : i32
      %6 = arith.cmpi eq, %arg1, %c0_i32_2 : i32
      %7 = arith.extui %6 : i1 to i32
      %c0_i32_3 = arith.constant 0 : i32
      %8 = arith.cmpi ne, %7, %c0_i32_3 : i32
      scf.if %8 {
        %cst_12 = arith.constant 0.000000e+00 : f32
        %18 = vector.broadcast %cst_12 : f32 to vector<8x128xf32>
        %c0_13 = arith.constant 0 : index
        %c0_14 = arith.constant 0 : index
        %19 = vector.load %arg8[%c0_13, %c0_14] : memref<8x128xf32, #tpu.memory_space<vmem>>, vector<8x128xf32>
        tpu.vector_store %arg8[%c0_13, %c0_14], %18 {strides = array<i32>} : memref<8x128xf32, #tpu.memory_space<vmem>>, vector<8x128xf32>,
      } else {
      }
      %c0 = arith.constant 0 : index
      %c0_4 = arith.constant 0 : index
      %9 = vector.load %arg8[%c0, %c0_4] : memref<8x128xf32, #tpu.memory_space<vmem>>, vector<8x128xf32>
      %c0_5 = arith.constant 0 : index
      %c0_6 = arith.constant 0 : index
      %10 = vector.load %arg2[%c0_5, %c0_6] : memref<8x128xf32, #tpu.memory_space<vmem>>, vector<8x128xf32>
      %c0_7 = arith.constant 0 : index
      %c0_8 = arith.constant 0 : index
      %11 = vector.load %arg3[%c0_7, %c0_8] : memref<128x128xf32, #tpu.memory_space<vmem>>, vector<128x128xf32>
      %cst = arith.constant dense<0.000000e+00> : vector<8x128xf32>
      %12 = tpu.matmul %10, %11, %cst {dimension_numbers = #tpu.dot_dimension_numbers<[1], [0], [0], [1], [0, 0, 1, 1], [], []>} : vector<8x128xf32>, vector<128x128xf32>, vector<8x128xf32> -> vector<8x128xf32>
      %13 = arith.addf %9, %12 : vector<8x128xf32>
      %c0_9 = arith.constant 0 : index
      %c0_10 = arith.constant 0 : index
      %14 = vector.load %arg8[%c0_9, %c0_10] : memref<8x128xf32, #tpu.memory_space<vmem>>, vector<8x128xf32>
      tpu.vector_store %arg8[%c0_9, %c0_10], %13 {strides = array<i32>} : memref<8x128xf32, #tpu.memory_space<vmem>>, vector<8x128xf32>,
      %c2_i32 = arith.constant 2 : i32
      %15 = arith.cmpi eq, %arg1, %c2_i32 : i32
      %16 = arith.extui %15 : i1 to i32
      %c0_i32_11 = arith.constant 0 : i32
      %17 = arith.cmpi ne, %16, %c0_i32_11 : i32
      scf.if %17 {
        %c0_12 = arith.constant 0 : index
        %c0_13 = arith.constant 0 : index
        %18 = vector.load %arg8[%c0_12, %c0_13] : memref<8x128xf32, #tpu.memory_space<vmem>>, vector<8x128xf32>
        %c0_14 = arith.constant 0 : index
        %c0_15 = arith.constant 0 : index
        %19 = vector.load %arg4[%c0_14, %c0_15] : memref<1x128xf32, #tpu.memory_space<vmem>>, vector<1x128xf32>
        %20 = vector.broadcast %19 : vector<1x128xf32> to vector<8x128xf32>
        %21 = arith.addf %18, %20 : vector<8x128xf32>
        %c0_16 = arith.constant 0 : index
        %c0_17 = arith.constant 0 : index
        %22 = vector.load %arg9[%c0_16, %c0_17] : memref<8x128xf32, #tpu.memory_space<vmem>>, vector<8x128xf32>
        tpu.vector_store %arg9[%c0_16, %c0_17], %21 {strides = array<i32>} : memref<8x128xf32, #tpu.memory_space<vmem>>, vector<8x128xf32>,
      } else {
      }
    } else {
    }
    %c3_i32_0 = arith.constant 3 : i32
    %3 = arith.cmpi sge, %arg1, %c3_i32_0 : i32
    %4 = arith.extui %3 : i1 to i32
    %c0_i32_1 = arith.constant 0 : i32
    %5 = arith.cmpi ne, %4, %c0_i32_1 : i32
    scf.if %5 {
      %c0 = arith.constant 0 : index
      %c0_2 = arith.constant 0 : index
      %6 = vector.load %arg9[%c0, %c0_2] : memref<8x128xf32, #tpu.memory_space<vmem>>, vector<8x128xf32>
      %c0_3 = arith.constant 0 : index
      %c0_4 = arith.constant 0 : index
      %7 = vector.load %arg5[%c0_3, %c0_4] : memref<128x128xf32, #tpu.memory_space<vmem>>, vector<128x128xf32>
      %cst = arith.constant dense<0.000000e+00> : vector<8x128xf32>
      %8 = tpu.matmul %6, %7, %cst {dimension_numbers = #tpu.dot_dimension_numbers<[1], [0], [0], [1], [0, 0, 1, 1], [], []>} : vector<8x128xf32>, vector<128x128xf32>, vector<8x128xf32> -> vector<8x128xf32>
      %c0_5 = arith.constant 0 : index
      %c0_6 = arith.constant 0 : index
      %9 = vector.load %arg6[%c0_5, %c0_6] : memref<1x128xf32, #tpu.memory_space<vmem>>, vector<1x128xf32>
      %10 = vector.broadcast %9 : vector<1x128xf32> to vector<8x128xf32>
      %11 = arith.addf %8, %10 : vector<8x128xf32>
      %c0_7 = arith.constant 0 : index
      %c0_8 = arith.constant 0 : index
      %12 = vector.load %arg7[%c0_7, %c0_8] : memref<8x128xf32, #tpu.memory_space<vmem>>, vector<8x128xf32>
      tpu.vector_store %arg7[%c0_7, %c0_8], %11 {strides = array<i32>} : memref<8x128xf32, #tpu.memory_space<vmem>>, vector<8x128xf32>,
    } else {
    }
    return
  }
  func.func @transform_0(%arg0: i32, %arg1: i32) -> (i32, i32) {
    %c2_i32 = arith.constant 2 : i32
    %0 = arith.minsi %arg1, %c2_i32 : i32
    %c0_i32 = arith.constant 0 : i32
    return %arg0, %0 : i32, i32
  }
  func.func @transform_1(%arg0: i32, %arg1: i32) -> (i32, i32) {
    %c2_i32 = arith.constant 2 : i32
    %0 = arith.minsi %arg1, %c2_i32 : i32
    %c0_i32 = arith.constant 0 : i32
    %c0_i32_0 = arith.constant 0 : i32
    return %0, %c0_i32 : i32, i32
  }
  func.func @transform_2(%arg0: i32, %arg1: i32) -> (i32, i32) {
    %c0_i32 = arith.constant 0 : i32
    %c0_i32_0 = arith.constant 0 : i32
    %c0_i32_1 = arith.constant 0 : i32
    return %c0_i32, %c0_i32_0 : i32, i32
  }
  func.func @transform_3(%arg0: i32, %arg1: i32) -> (i32, i32) {
    %c3_i32 = arith.constant 3 : i32
    %0 = arith.subi %arg1, %c3_i32 : i32
    %c0_i32 = arith.constant 0 : i32
    %1 = arith.maxsi %0, %c0_i32 : i32
    %c0_i32_0 = arith.constant 0 : i32
    %c0_i32_1 = arith.constant 0 : i32
    return %c0_i32_0, %1 : i32, i32
  }
  func.func @transform_4(%arg0: i32, %arg1: i32) -> (i32, i32) {
    %c3_i32 = arith.constant 3 : i32
    %0 = arith.subi %arg1, %c3_i32 : i32
    %c0_i32 = arith.constant 0 : i32
    %1 = arith.maxsi %0, %c0_i32 : i32
    %c0_i32_0 = arith.constant 0 : i32
    %c0_i32_1 = arith.constant 0 : i32
    return %c0_i32_0, %1 : i32, i32
  }
  func.func @transform_5(%arg0: i32, %arg1: i32) -> (i32, i32) {
    %c3_i32 = arith.constant 3 : i32
    %0 = arith.subi %arg1, %c3_i32 : i32
    %c0_i32 = arith.constant 0 : i32
    %1 = arith.maxsi %0, %c0_i32 : i32
    %c0_i32_0 = arith.constant 0 : i32
    return %arg0, %1 : i32, i32
  }
}

</mosaic_0001>

<bundles_post_ra>
// kernel: tpu_custom_call.1
= control target key start
LH: loop header
LB: loop body
LE: loop exit
PB: predicated region body
PF: predicated region fallthrough
CT: control target
= control target key end

     0   :  { %s1973_s0 = inlined_call_operand.hbm [shape: f32[24,384], index: 0, kind: input, shape index: {}]   ;;  %s1974_s1 = inlined_call_operand.hbm [shape: f32[384,128], index: 1, kind: input, shape index: {}]   ;;  %s1975_s2 = inlined_call_operand.vmem [shape: f32[1,128], index: 2, kind: input, shape index: {}]   ;;  %s1976_s3 = inlined_call_operand.hbm [shape: f32[128,384], index: 3, kind: input, shape index: {}]   ;;  %s1977_s4 = inlined_call_operand.vmem [shape: f32[1,384], index: 4, kind: input, shape index: {}]   ;;  %s1978_s5 = inlined_call_operand.hbm [shape: f32[24,384], index: 5, kind: output, shape index: {}]  }
   0x1   :  { %2001 = sst [smem:[#allocation28_spill]] %s1974_s1 }
   0x2   :  { %2002 = sst [smem:[#allocation29_spill]] %s1975_s2 }
   0x3   :  { %2003 = sst [smem:[#allocation30_spill]] %s1977_s4 }
   0x4   :  { %2004 = sst [smem:[#allocation31_spill]] %s1978_s5 }
   0x5   :  { %10 = vsyncpa [#allocation5], 0 }
   0x6   :  { %12 = vsyncpa [#allocation5 + $0x1], 0 }
   0x7   :  { %13 = vsyncpa [#allocation8], 0 }
   0x8   :  { %15 = vsyncpa [#allocation8 + $0x1], 0 }
   0x9   :  { %16 = vsyncpa [#allocation6], 0 }
   0xa   :  { %18 = vsyncpa [#allocation6 + $0x1], 0  ;;  %s1456_s18 = smov 0   ;;  %s1458_s19 = smov 0  }
   0xb   :  { %s1460_s20 = smov 0   ;;  %s1462_s21 = smov 0  }
   0xc   :  { %s1464_s22 = smov 0   ;;  %s1466_s23 = smov 0  }
   0xd   :  { %s1468_s24 = smov 0   ;;  %s1470_s25 = smov 0  }
   0xe   :  { %s1472_s26 = smov 0   ;;  %s1474_s27 = smov 0  }
   0xf   :  { %s1476_s28 = smov 0   ;;  %s1478_s29 = smov 0  }
  0x10   :  { %s1480_s30 = smov 0   ;;  %s1482_s6 = smov 0  }
  0x11   :  { %s1484_s7 = smov 0   ;;  %s1486_s8 = smov 0  }
  0x12   :  { %s1488_s9 = smov 0  }
  0x13 LB: > { %2005 = sst [smem:[#allocation15_spill]] %s1346_s18  ;;  %p40_p0 = scmp.lt.s32.totalorder %s1402_s7, 2  ;;  %s1410_s9 = sphi %s1488_s9, %s24_s9   ;;  %s1406_s8 = sphi %s1486_s8, %s2081_s8   ;;  %s1402_s7 = sphi %s1484_s7, %s2068_s7   ;;  %s1398_s6 = sphi %s1482_s6, %s2080_s6   ;;  %s1394_s30 = sphi %s1480_s30, %s2067_s30   ;;  %s1390_s29 = sphi %s1478_s29, %s2079_s29   ;;  %s1386_s28 = sphi %s1476_s28, %s2078_s28   ;;  %s1382_s27 = sphi %s1474_s27, %s2065_s27   ;;  %s1378_s26 = sphi %s1472_s26, %s2064_s26   ;;  %s1374_s25 = sphi %s1470_s25, %s2077_s25   ;;  %s1370_s24 = sphi %s1468_s24, %s2076_s24   ;;  %s1366_s23 = sphi %s1466_s23, %s2075_s23   ;;  %s1362_s22 = sphi %s1464_s22, %s2074_s22   ;;  %s1358_s21 = sphi %s1462_s21, %s2073_s21   ;;  %s1354_s20 = sphi %s1460_s20, %s2072_s20   ;;  %s1350_s19 = sphi %s1458_s19, %s2070_s19   ;;  %s1346_s18 = sphi %s1456_s18, %s2061_s18  }
  0x14   : > { %2006 = sst [smem:[#allocation16_spill]] %s1350_s19  ;;  %p1981_p1 = scmp.eq.s32.totalorder %s1410_s9, 0 }
  0x15   : > { %2007 = sst [smem:[#allocation17_spill]] %s1378_s26  ;;  %p86_p2 = scmp.ne.s32.totalorder %s1378_s26, %s1374_s25 }
  0x16   : > { %2008 = sst [smem:[#allocation18_spill]] %s1386_s28  ;;  %p1980_p5 = scmp.lt.s32.totalorder %s1410_s9, 18 }
  0x17   : > { %2009 = sst [smem:[#allocation19_spill]] %s1394_s30  ;;  %p88_p3 = por %p86_p2, %p1981_p1 }
  0x18   : > { %2010 = sst [smem:[#allocation20_spill]] %s1398_s6  ;;  %s260_s12 = sand.u32 1, %s1410_s9  }
  0x19   : > { %2011 = sst [smem:[#allocation21_spill]] %s1402_s7  ;;  %s262_s13 = sand.u32 1, %s1378_s26  }
  0x1a   : > { %s1547_s11 = scalar_select %p40_p0, %s1402_s7, 2 }
  0x1b   : > { %s787_s14 = sshll.u32 %s262_s13, 7  ;;  %s2012_s1 = sld [smem:[#allocation28_spill]] }
  0x1c   : > { %s815_s15 = sshll.u32 %s1547_s11, 11  ;;  %s264_s10 = scalar_lea.vmem [#allocation7], %s787_s14 }
  0x1d   : > { %s273_s6 = sshll.u32 %s264_s10, 4  ;;  %p1566_p6 = pnand %p1980_p5, %p88_p3  ;;  %s1562_s6 = int_to_ptr.vmem [resolvable:$true] %s273_s6 }
  0x1e   : > { %p793_p7 = scmp.ge.s32.totalorder %s1410_s9, 1  ;;  %s1571_s13 = scalar_lea.sflag [#allocation8], %s260_s12 }
  0x1f   : > { %p1144_p9 = pneg %p1566_p6 }
  0x21   : > { %s1560_s5 = scalar_lea.hbm %s2012_s1, %s815_s15  ;;  %s1147_s16 = scalar_lea.hbm %s2012_s1, 6144 }
  0x22   : > { %s1142_s15 = scalar_lea.hbm %s1560_s5, 2048  ;;  %p1148_p12 = scmp.lt.u32.totalorder %s1560_s5, %s2012_s1 }
  0x23   : > { %p1143_p8 = scmp.ne.s32.totalorder %s1560_s5, %s1142_s15  ;;  %p1149_p13 = scmp.lt.u32.totalorder %s1147_s16, %s1142_s15 }
  0x24   : > { %p1151_p2 = scmp.lt.u32.totalorder %s1142_s15, %s1560_s5 }
  0x25   : > { %p1145_p10 = pnand %p1144_p9, %p1143_p8  ;;  %p1150_p0 = por %p1149_p13, %p1148_p12 }
  0x27   : > { %p1146_p11 = pneg %p1145_p10  ;;  %p1152_p3 = por %p1151_p2, %p1150_p0 }
  0x29   : > { %p1153_p5 = pnand %p1152_p3, %p1146_p11 }
  0x2b   : > { %1156 = shalt.err (!%p1153_p5)
}
  0x2c   : > { %s1157_s12 = scalar_lea.vmem %s1562_s6, 2048  ;;  %s1412_s10 = smov [#allocation7]  }
  0x2d   : > { %p1158_p8 = scmp.ne.s32.totalorder %s1562_s6, %s1157_s12  ;;  %s1162_s14 = sshll.u32 %s1412_s10, 4  ;;  %s1163_s14 = int_to_ptr.vmem [resolvable:$false] %s1162_s14 }
  0x2e   : > { %s1164_s4 = scalar_lea.vmem %s1163_s14, 4096  ;;  %p1165_p1 = scmp.lt.s32.totalorder %s1562_s6, %s1163_s14 }
  0x2f   : > { %p1160_p10 = pnand %p1158_p8, %p1144_p9  ;;  %p1166_p12 = scmp.lt.s32.totalorder %s1164_s4, %s1157_s12 }
  0x31   : > { %p1161_p4 = pneg %p1160_p10  ;;  %p1167_p13 = por %p1166_p12, %p1165_p1 }
  0x33   : > { %p1168_p0 = pnand %p1167_p13, %p1161_p4 }
  0x35   : > { %1171 = shalt.err (!%p1168_p0)
}
  0x36   : > { %s1982_s15 = smov 128   ;;  %s1983_s16 = smov 8  }
  0x37   : > { %986 = dma.hbm_to_vmem [thread:$0]  (!%p1566_p6), %s1560_s5, 2048, %s1562_s6, %s1571_s13, %s1982_s15, %s1982_s15, %s1983_s16  }
  0x38   : > { %p316_p1 = scmp.lt.s32.totalorder %s1410_s9, 19  ;;  %s1610_s12 = sadd.s32 4294967295, %s1410_s9  }
  0x39   : > { %s33_s14 = sadd.s32 1, %s1402_s7  ;;  %s36_s4 = sadd.s32 1, %s1406_s8 }
  0x3a   : > { %p1605_p4 = pnand %p793_p7, %p316_p1  ;;  %p34_p5 = scmp.ge.s32.totalorder %s33_s14, 6 }
  0x3b   : > { %s49_s2 = sadd.s32 1, %s1390_s29  ;;  %p56_p6 = scmp.ne.s32.totalorder %s1390_s29, %s1386_s28 }
  0x3c   : > { %p62_p9 = scmp.ne.s32.totalorder %s1386_s28, %s1382_s27  ;;  %s2083_s14 = smov (%p34_p5, %s33_s14), 0 }
  0x3d   : > { %2015 = sst [smem:[#allocation22_spill]] %s2083_s14  ;;  %s2085_s4 = smov (!%p34_p5, %s36_s4), %s1406_s8 }
  0x3e   : > { %p42_p7 = scmp.lt.s32.totalorder %s2083_s14, 2  ;;  %p2016_p11 = scmp.eq.s32.totalorder %s1410_s9, 0 }
  0x3f   : > { %p38_p3 = scmp.ge.s32.totalorder %s2085_s4, 3  ;;  %p63_p8 = scmp.eq.s32.totalorder %s1610_s12, 0 }
  0x40   : > { %p1626_p2 = por %p2016_p11, %p56_p6  ;;  %p2021_p13 = scmp.ne.s32.totalorder %s1374_s25, %s1370_s24 }
  0x41   : > { %s43_s27 = scalar_select %p42_p7, %s2083_s14, 2 }
  0x42   : > { %s2087_s4 = smov (%p38_p3, %s2085_s4), 0  ;;  %p1637_p10 = por %p63_p8, %p62_p9 }
  0x43   : > { %2018 = sst [smem:[#allocation23_spill]] %s2087_s4  ;;  %s45_s6 = ssub.s32 %s1547_s11, %s43_s27 }
  0x44   : > { %s2019_s15 = scalar_select %p1637_p10, 1, 0 }
  0x45   : > { %s44_s16 = ssub.s32 %s1406_s8, %s2087_s4  ;;  %p77_p12 = scmp.eq.s32.totalorder %s45_s6, 0 }
  0x46   : > { %2020 = sst [smem:[#allocation24_spill]] %s2019_s15  ;;  %s46_s10 = sor.u32 %s45_s6, %s44_s16 }
  0x47   : > { %p1648_p0 = por %p2021_p13, %p63_p8  ;;  %p47_p1 = scmp.eq.s32.totalorder %s46_s10, 0 }
  0x48   : > { %s777_s27 = sadd.s32 4294967293, %s1402_s7  ;;  %s2023_s30 = sadd.s32 1, %s1378_s26 }
  0x49   : > { %s2022_s1 = scalar_select %p1648_p0, 1, 0 }
  0x4a   : > { %s1656_s28 = scalar_select %p77_p12, %s1378_s26, %s2023_s30  }
  0x4b   : > { %s1659_s15 = scalar_select %p47_p1, %s1390_s29, %s49_s2  }
  0x4c   : > { %2024 = sst [smem:[#allocation25_spill]] %s1656_s28  ;;  %p124_p5 = scmp.gt.s32.totalorder %s777_s27, 0 }
  0x4d   : > { %2025 = sst [smem:[#allocation26_spill]] %s1659_s15  ;;  %s778_s6 = sadd.s32 4294967293, %s2083_s14 }
  0x4e   : > { %p127_p6 = scmp.gt.s32.totalorder %s778_s6, 0  ;;  %p145_p9 = scmp.ne.s32.totalorder %s1362_s22, %s1358_s21 }
  0x4f   : > { %s2089_s27 = smov (!%p124_p5, %s777_s27), 0  ;;  %s198_s30 = sadd.s32 1, %s1354_s20 }
  0x50   : > { %s2091_s6 = smov (!%p127_p6, %s778_s6), 0  ;;  %p1668_p7 = por %p145_p9, %p63_p8 }
  0x51   : > { %s1674_s10 = ssub.s32 %s2089_s27, %s2091_s6  ;;  %p208_p11 = scmp.ne.s32.totalorder %s1354_s20, %s1350_s19 }
  0x52   : > { %s2026_s24 = scalar_select %p1668_p7, 1, 0 }
  0x53   : > { %s195_s21 = sor.u32 %s1674_s10, %s44_s16  ;;  %p209_p13 = scmp.eq.s32.totalorder %s1610_s12, 17 }
  0x54   : > { %2027 = sst [smem:[#allocation27_spill]] %s2026_s24  ;;  %p196_p12 = scmp.eq.s32.totalorder %s195_s21, 0 }
  0x55   : > { %p214_p1 = scmp.ne.s32.totalorder %s1350_s19, %s1346_s18  ;;  %s2028_s2 = sadd.s32 4294967294, %s1410_s9  }
  0x56   : > { %p215_p8 = scmp.eq.s32.totalorder %s2028_s2, 17  ;;  %p1688_p5 = por %p209_p13, %p208_p11 }
  0x57   : > { %s1686_s4 = scalar_select %p196_p12, %s1354_s20, %s198_s30  }
  0x58   : > { %s2029_s14 = scalar_select %p1688_p5, 1, 0 }
  0x59   : > { %p1692_p6 = por %p215_p8, %p214_p1  ;;  %s238_s16 = sand.u32 1, %s1390_s29  }
  0x5a   : > { %s970_s21 = smul.u32 3, %s1406_s8  ;;  %s785_s7 = sshll.u32 %s238_s16, 3 }
  0x5b   : > { %s2030_s6 = scalar_select %p1692_p6, 1, 0 }
  0x5c   : > { %s249_s15 = sadd.s32 %s970_s21, %s1547_s11  ;;  %s242_s26 = scalar_lea.vmem [#allocation4], %s785_s7 }
  0x5d   : > { %s786_s28 = sshll.u32 %s249_s15, 7  ;;  %s253_s18 = sshll.u32 %s242_s26, 4  ;;  %s1704_s18 = int_to_ptr.vmem [resolvable:$true] %s253_s18 }
  0x5e   : > { %s1702_s30 = scalar_lea.hbm %s1973_s0, %s786_s28  ;;  %p2031_p9 = scmp.lt.s32.totalorder %s1410_s9, 18 }
  0x5f   : > { %s792_s26 = sshll.u32 %s2089_s27, 7  ;;  %s132_s7 = sadd.s32 1, %s1366_s23 }
  0x60   : > { %p1710_p11 = pnand %p2031_p9, %p1626_p2  ;;  %s239_s11 = scalar_lea.sflag [#allocation5], %s238_s16 }
  0x61   : > { %s1172_s19 = scalar_lea.hbm %s1702_s30, 128  ;;  %s1177_s5 = scalar_lea.hbm %s1973_s0, 1152 }
  0x62   : > { %p1173_p12 = scmp.ne.s32.totalorder %s1702_s30, %s1172_s19  ;;  %p1174_p13 = pneg %p1710_p11 }
  0x63   : > { %p1178_p2 = scmp.lt.u32.totalorder %s1702_s30, %s1973_s0  ;;  %p1179_p9 = scmp.lt.u32.totalorder %s1177_s5, %s1172_s19 }
  0x64   : > { %p1175_p1 = pnand %p1174_p13, %p1173_p12  ;;  %p1181_p6 = scmp.lt.u32.totalorder %s1172_s19, %s1702_s30 }
  0x65   : > { %p1180_p3 = por %p1179_p9, %p1178_p2 }
  0x66   : > { %p1176_p8 = pneg %p1175_p1 }
  0x67   : > { %p1182_p5 = por %p1181_p6, %p1180_p3 }
  0x69   : > { %p1183_p7 = pnand %p1182_p5, %p1176_p8 }
  0x6b   : > { %1186 = shalt.err (!%p1183_p7)
}
  0x6c   : > { %s1187_s16 = scalar_lea.vmem %s1704_s18, 128  ;;  %s1415_s28 = smov [#allocation4]  }
  0x6d   : > { %p1188_p12 = scmp.ne.s32.totalorder %s1704_s18, %s1187_s16  ;;  %s1192_s15 = sshll.u32 %s1415_s28, 4  ;;  %s1193_s15 = int_to_ptr.vmem [resolvable:$false] %s1192_s15 }
  0x6e   : > { %s1194_s24 = scalar_lea.vmem %s1193_s15, 256  ;;  %p1195_p10 = scmp.lt.s32.totalorder %s1704_s18, %s1193_s15 }
  0x6f   : > { %p1190_p1 = pnand %p1188_p12, %p1174_p13  ;;  %p1196_p2 = scmp.lt.s32.totalorder %s1194_s24, %s1187_s16 }
  0x71   : > { %p1191_p0 = pneg %p1190_p1  ;;  %p1197_p9 = por %p1196_p2, %p1195_p10 }
  0x73   : > { %p1198_p3 = pnand %p1197_p9, %p1191_p0 }
  0x75   : > { %1201 = shalt.err (!%p1198_p3)
}
  0x76   : > { %983 = dma.hbm_to_vmem [thread:$0]  (!%p1710_p11), %s1702_s30, 128, %s1704_s18, %s239_s11  }
  0x77   : > { %p2033_p7 = scmp.eq.s32.totalorder %s1674_s10, 0  ;;  %p139_p10 = scmp.ne.s32.totalorder %s1366_s23, %s1362_s22 }
  0x78   : > { %s285_s5 = sand.u32 1, %s1366_s23   ;;  %s1756_s28 = scalar_lea.hbm %s1976_s3, %s792_s26 }
  0x79   : > { %s1746_s19 = scalar_select %p2033_p7, %s1366_s23, %s132_s7  }
  0x7a   : > { %s790_s21 = sshll.u32 %s285_s5, 7  ;;  %p2034_p0 = scmp.eq.s32.totalorder %s1410_s9, 0 }
  0x7b   : > { %s287_s18 = scalar_lea.vmem [#allocation9], %s790_s21  ;;  %p2035_p6 = scmp.lt.s32.totalorder %s1410_s9, 18 }
  0x7c   : > { %p141_p5 = por %p139_p10, %p2034_p0  ;;  %s296_s30 = sshll.u32 %s287_s18, 4  ;;  %s1760_s30 = int_to_ptr.vmem [resolvable:$true] %s296_s30 }
  0x7d   : > { %s1202_s27 = scalar_lea.hbm %s1756_s28, 2048  ;;  %s1207_s11 = scalar_lea.hbm %s1976_s3, 6144 }
  0x7e   : > { %p1764_p11 = pnand %p2035_p6, %p141_p5  ;;  %p1203_p13 = scmp.ne.s32.totalorder %s1756_s28, %s1202_s27 }
  0x7f   : > { %p1208_p2 = scmp.lt.u32.totalorder %s1756_s28, %s1976_s3  ;;  %p1209_p9 = scmp.lt.u32.totalorder %s1207_s11, %s1202_s27 }
  0x80   : > { %p1204_p8 = pneg %p1764_p11  ;;  %p1211_p7 = scmp.lt.u32.totalorder %s1202_s27, %s1756_s28 }
  0x81   : > { %p1210_p3 = por %p1209_p9, %p1208_p2 }
  0x82   : > { %p1205_p12 = pnand %p1204_p8, %p1203_p13 }
  0x83   : > { %p1212_p10 = por %p1211_p7, %p1210_p3 }
  0x84   : > { %p1206_p1 = pneg %p1205_p12 }
  0x86   : > { %p1213_p0 = pnand %p1212_p10, %p1206_p1 }
  0x88   : > { %1216 = shalt.err (!%p1213_p0)
}
  0x89   : > { %s1217_s5 = scalar_lea.vmem %s1760_s30, 2048  ;;  %s1416_s21 = smov [#allocation9]  }
  0x8a   : > { %p1218_p5 = scmp.ne.s32.totalorder %s1760_s30, %s1217_s5  ;;  %s1222_s2 = sshll.u32 %s1416_s21, 4  ;;  %s1223_s2 = int_to_ptr.vmem [resolvable:$false] %s1222_s2 }
  0x8b   : > { %s1224_s16 = scalar_lea.vmem %s1223_s2, 4096  ;;  %p1225_p12 = scmp.lt.s32.totalorder %s1760_s30, %s1223_s2 }
  0x8c   : > { %p1220_p6 = pnand %p1218_p5, %p1204_p8  ;;  %p1226_p2 = scmp.lt.s32.totalorder %s1224_s16, %s1217_s5 }
  0x8e   : > { %p1221_p13 = pneg %p1220_p6  ;;  %p1227_p9 = por %p1226_p2, %p1225_p12 }
  0x90   : > { %p1228_p3 = pnand %p1227_p9, %p1221_p13 }
  0x92   : > { %1231 = shalt.err (!%p1228_p3)
}
  0x93   : > { %s1417_s18 = smov 384   ;;  %s2037_s27 = smov 8  }
  0x94   : > { %s2038_s26 = smov 128   ;;  %320 = sbr.rel (%p1605_p4) target bundleno = 743 (0x2e7), region = 40 }
  0x95   : > { %989 = dma.hbm_to_vmem [thread:$0]  (!%p1764_p11), %s1756_s28, 2048, %s1760_s30, %s1571_s13, %s1417_s18, %s2038_s26, %s2037_s27  }
  0x96   : > { %s2039_s7 = sld [smem:[#allocation18_spill]] (!%p1605_p4)  ;;  %s2040_s11 = sld [smem:[#allocation24_spill]] (!%p1605_p4) }
  0x9c   : > { %s322_s15 = sand.u32 1, %s2039_s7   ;;  %p2041_p8 = scmp.ne.s32.totalorder %s2040_s11, 0 }
  0x9d   : > { %s1799_s24 = sshll.u32 %s322_s15, 3  ;;  %s323_s5 = scalar_lea.sflag [#allocation5], %s322_s15 }
  0x9e   : > { %s326_s21 = scalar_lea.vmem [#allocation4], %s1799_s24 }
  0x9f   : > { %1329 = dma.done.wait (%p2041_p8), %s323_s5, 128  }
  0xa0   : > { %1331 = vsyncadd (%p2041_p8), %s323_s5, 4294967168  ;;  %s331_s13 = sand.u32 1, %s1610_s12   ;;  %s333_s28 = sand.u32 1, %s1374_s25  }
  0xa1   : > { %s795_s17 = sshll.u32 %s333_s28, 7  ;;  %s332_s30 = scalar_lea.sflag [#allocation8], %s331_s13 }
  0xa2   : > { %s1808_s10 = scalar_lea.vmem [#allocation7], %s795_s17  ;;  %p2042_p4 = scmp.ne.s32.totalorder %s2022_s1, 0 }
  0xa4   : > { %1333 = dma.done.wait (%p2042_p4), %s332_s30, 2048  }
  0xa5   : > { %1335 = vsyncadd (%p2042_p4), %s332_s30, 4294965248  ;;  %s2043_s2 = sld [smem:[#allocation27_spill]]  ;;  %s342_s16 = sand.u32 1, %s1362_s22  }
  0xa6   : > { %s796_s18 = sshll.u32 %s342_s16, 7 }
  0xa7   : > { %s1815_s27 = scalar_lea.vmem [#allocation9], %s796_s18 }
  0xab   : > { %p2044_p11 = scmp.ne.s32.totalorder %s2043_s2, 0 }
  0xad   : > { %1337 = dma.done.wait (%p2044_p11), %s332_s30, 2048  }
  0xae   : > { %1339 = vsyncadd (%p2044_p11), %s332_s30, 4294965248  ;;  %s2045_s12 = sld [smem:[#allocation16_spill]]  ;;  %s2046_s26 = sld [smem:[#allocation19_spill]] }
  0xaf   : > { %s2047_s28 = sld [smem:[#allocation30_spill]] }
  0xb4   : > { %s384_s7 = sand.u32 1, %s2045_s12   ;;  %s798_s11 = sadd.s32 4294967293, %s2046_s26 }
  0xb5   : > { %s1825_s15 = sshll.u32 %s384_s7, 3  ;;  %p396_p1 = scmp.gt.s32.totalorder %s798_s11, 0 }
  0xb6   : > { %p799_p7 = scmp.lt.s32.totalorder %s798_s11, 2  ;;  %s386_s30 = scalar_lea.vmem [#allocation10], %s1825_s15 }
  0xb7   : > { %s2093_s11 = smov (!%p396_p1, %s798_s11), 0  ;;  %p804_p10 = scmp.ge.s32.totalorder %s2046_s26, 3 }
  0xb8   : > { %s1830_s1 = scalar_select %p799_p7, %s2093_s11, 2 }
  0xb9   : > { %410 = sbr.rel (%p804_p10) target bundleno = 459 (0x1cb), region = 56  ;;  %s2048_s2 = sld [smem:[#allocation19_spill]] (!%p804_p10) }
  0xba   : > { %s400_s17 = scalar_lea.vmem %s2047_s28, %s1830_s1 }
  0xbf   : > { %p805_p0 = scmp.ne.s32.totalorder (!%p804_p10), %s2048_s2, 0 }
  0xc0   : > { %v1418_v0 = vmov (!%p805_p0), 0.0  }
  0xc1   : > { %414 = sbr.rel (%p805_p0) target bundleno = 200 (0xc8), region = 60  ;;  %415 = vst [vmem:[#allocation2] sm:$0xff] (!%p805_p0), %v1418_v0 }
  0xc8 PF: > { %v418_v1 = vld [vmem:[%s1808_s10] sm:$0xff]  ;;  %v419_v2 = vld [vmem:[%s1808_s10 + $0x8] sm:$0xff]  ;;  %v420_v3 = vld [vmem:[%s1808_s10 + $0x10] sm:$0xff]  ;;  %v1419_v4 = vmov 0.0|0.0   ;;  %vm1420_vm0 = vmmov 0   ;;  %v1421_v7 = vmov 0.0  }
  0xc9   : > { %922 = vmatprep.subr.bf16.mxu0 %v1419_v4  ;;  %v923_v5 = vpack.c.bf16 %v419_v2, %v418_v1  ;;  %v421_v6 = vld [vmem:[%s1808_s10 + $0x18] sm:$0xff]  ;;  %884 = vmatprep.mubr.msk.f32.mxu0 %vm1420_vm0, %v1421_v7  ;;  %v422_v9 = vld [vmem:[%s1808_s10 + $0x20] sm:$0xff]  ;;  %v423_v10 = vld [vmem:[%s1808_s10 + $0x28] sm:$0xff]  ;;  %s2049_s16 = sld [smem:[#allocation19_spill]] }
  0xca   : > { %v926_v8 = vpack.c.bf16 %v421_v6, %v420_v3  ;;  %v929_v11 = vpack.c.bf16 %v423_v10, %v422_v9  ;;  %v424_v12 = vld [vmem:[%s1808_s10 + $0x30] sm:$0xff]  ;;  %v425_v13 = vld [vmem:[%s1808_s10 + $0x38] sm:$0xff]  ;;  %v426_v15 = vld [vmem:[%s1808_s10 + $0x40] sm:$0xff] }
  0xcb   : > { %924 = vmatpush3.bf16.msra.mxu0 %v923_v5  ;;  %v932_v14 = vpack.c.bf16 %v425_v13, %v424_v12  ;;  %v427_v16 = vld [vmem:[%s1808_s10 + $0x48] sm:$0xff]  ;;  %v428_v18 = vld [vmem:[%s1808_s10 + $0x50] sm:$0xff]  ;;  %v429_v19 = vld [vmem:[%s1808_s10 + $0x58] sm:$0xff] }
  0xcc   : > { %925 = vmatprep.subr.bf16.mxu0 %v1419_v4  ;;  %v935_v17 = vpack.c.bf16 %v427_v16, %v426_v15  ;;  %v938_v20 = vpack.c.bf16 %v429_v19, %v428_v18  ;;  %v430_v21 = vld [vmem:[%s1808_s10 + $0x60] sm:$0xff]  ;;  %v431_v22 = vld [vmem:[%s1808_s10 + $0x68] sm:$0xff]  ;;  %v432_v24 = vld [vmem:[%s1808_s10 + $0x70] sm:$0xff] }
  0xcd   : > { %v941_v23 = vpack.c.bf16 %v431_v22, %v430_v21  ;;  %v433_v25 = vld [vmem:[%s1808_s10 + $0x78] sm:$0xff]  ;;  %v416_v28 = vld [vmem:[#allocation2] sm:$0xff] }
  0xce   : > { %v944_v26 = vpack.c.bf16 %v433_v25, %v432_v24  ;;  %v417_v27 = vld [vmem:[%s326_s21] sm:$0xff] }
  0xcf   : > { %927 = vmatpush3.bf16.msra.mxu0 %v926_v8  ;;  %p806_p5 = scmp.ne.s32.totalorder %s2049_s16, 2 }
  0xd0   : > { %928 = vmatprep.subr.bf16.mxu0 %v1419_v4  ;;  %s2050_s26 = sld [smem:[#allocation29_spill]] (!%p806_p5) }
  0xd3   : > { %930 = vmatpush3.bf16.msra.mxu0 %v929_v11 }
  0xd4   : > { %931 = vmatprep.subr.bf16.mxu0 %v1419_v4 }
  0xd6   : > { %v807_v33 = vld [vmem:[%s2050_s26] ss:$0 sm:$0xff] (!%p806_p5) }
  0xd7   : > { %933 = vmatpush3.bf16.msra.mxu0 %v932_v14 }
  0xd8   : > { %934 = vmatprep.subr.bf16.mxu0 %v1419_v4 }
  0xdb   : > { %936 = vmatpush3.bf16.msra.mxu0 %v935_v17 }
  0xdc   : > { %937 = vmatprep.subr.bf16.mxu0 %v1419_v4 }
  0xdf   : > { %939 = vmatpush3.bf16.msra.mxu0 %v938_v20 }
  0xe0   : > { %940 = vmatprep.subr.bf16.mxu0 %v1419_v4 }
  0xe3   : > { %942 = vmatpush3.bf16.msra.mxu0 %v941_v23 }
  0xe4   : > { %943 = vmatprep.subr.bf16.mxu0 %v1419_v4 }
  0xe7   : > { %945 = vmatpush3.bf16.msra.mxu0 %v944_v26 }
  0xea   : > { %885 = vmatmul.mubr.f32.vlgmr.msra.gmra.mrb[0].mxu0 %v417_v27 }
 0x1ba   : > { %509 = sbr.rel (%p806_p5) target bundleno = 459 (0x1cb), region = 64 }
 0x1bd   : > { %v500_v29 = vpop.f32.mrb[0].mxu0 }
 0x1be   : > { %v504_v30 = vadd.f32 %v500_v29, %v416_v28  ;;  %v886_v31 = vpop.f32.mrb[1].mxu0 }
 0x1c0   : > { %505 = vst [vmem:[#allocation2] sm:$0xff] %v504_v30 }
 0x1c7   : > { %v510_v32 = vld [vmem:[#allocation2] sm:$0xff] }
 0x1c8   : > { %v518_v34 = vadd.f32 %v807_v33, %v510_v32 }
 0x1ca   : > { %519 = vst [vmem:[#allocation3] sm:$0xff] %v518_v34 }
 0x1cb PF: > { %s2051_s24 = sld [smem:[#allocation19_spill]] }
 0x1d1   : > { %p808_p6 = scmp.lt.s32.totalorder %s2051_s24, 3 }
 0x1d2   : > { %v525_v35 = vld [vmem:[%s1815_s27] sm:$0xff] (!%p808_p6)  ;;  %v526_v36 = vld [vmem:[%s1815_s27 + $0x8] sm:$0xff] (!%p808_p6)  ;;  %v527_v37 = vld [vmem:[%s1815_s27 + $0x10] sm:$0xff] (!%p808_p6)  ;;  %v1422_v38 = vmov (!%p808_p6), 0.0|0.0   ;;  %vm1423_vm1 = vmmov (!%p808_p6), 0   ;;  %v1424_v41 = vmov (!%p808_p6), 0.0  }
 0x1d3   : > { %523 = sbr.rel (%p808_p6) target bundleno = 715 (0x2cb), region = 68  ;;  %946 = vmatprep.subr.bf16.mxu0 (!%p808_p6), %v1422_v38  ;;  %v947_v39 = vpack.c.bf16 (!%p808_p6), %v526_v36, %v525_v35  ;;  %v528_v40 = vld [vmem:[%s1815_s27 + $0x18] sm:$0xff] (!%p808_p6)  ;;  %919 = vmatprep.mubr.msk.f32.mxu0 (!%p808_p6), %vm1423_vm1, %v1424_v41  ;;  %v529_v43 = vld [vmem:[%s1815_s27 + $0x20] sm:$0xff] (!%p808_p6)  ;;  %v530_v44 = vld [vmem:[%s1815_s27 + $0x28] sm:$0xff] (!%p808_p6) }
 0x1d4   : > { %v950_v42 = vpack.c.bf16 (!%p808_p6), %v528_v40, %v527_v37  ;;  %v953_v45 = vpack.c.bf16 (!%p808_p6), %v530_v44, %v529_v43  ;;  %v531_v46 = vld [vmem:[%s1815_s27 + $0x30] sm:$0xff] (!%p808_p6)  ;;  %v532_v47 = vld [vmem:[%s1815_s27 + $0x38] sm:$0xff] (!%p808_p6)  ;;  %v533_v49 = vld [vmem:[%s1815_s27 + $0x40] sm:$0xff] (!%p808_p6) }
 0x1d5   : > { %948 = vmatpush3.bf16.msra.mxu0 (!%p808_p6), %v947_v39  ;;  %v956_v48 = vpack.c.bf16 (!%p808_p6), %v532_v47, %v531_v46  ;;  %v534_v50 = vld [vmem:[%s1815_s27 + $0x48] sm:$0xff] (!%p808_p6)  ;;  %v535_v52 = vld [vmem:[%s1815_s27 + $0x50] sm:$0xff] (!%p808_p6)  ;;  %v536_v53 = vld [vmem:[%s1815_s27 + $0x58] sm:$0xff] (!%p808_p6) }
 0x1d6   : > { %949 = vmatprep.subr.bf16.mxu0 (!%p808_p6), %v1422_v38  ;;  %v959_v51 = vpack.c.bf16 (!%p808_p6), %v534_v50, %v533_v49  ;;  %v962_v54 = vpack.c.bf16 (!%p808_p6), %v536_v53, %v535_v52  ;;  %v537_v55 = vld [vmem:[%s1815_s27 + $0x60] sm:$0xff] (!%p808_p6)  ;;  %v538_v56 = vld [vmem:[%s1815_s27 + $0x68] sm:$0xff] (!%p808_p6)  ;;  %v539_v58 = vld [vmem:[%s1815_s27 + $0x70] sm:$0xff] (!%p808_p6) }
 0x1d7   : > { %v965_v57 = vpack.c.bf16 (!%p808_p6), %v538_v56, %v537_v55  ;;  %v540_v59 = vld [vmem:[%s1815_s27 + $0x78] sm:$0xff] (!%p808_p6)  ;;  %v524_v61 = vld [vmem:[#allocation3] sm:$0xff] (!%p808_p6)  ;;  %v809_v62 = vld [vmem:[%s400_s17] ss:$0 sm:$0xff] (!%p808_p6) }
 0x1d8   : > { %v968_v60 = vpack.c.bf16 (!%p808_p6), %v540_v59, %v539_v58 }
 0x1d9   : > { %951 = vmatpush3.bf16.msra.mxu0 (!%p808_p6), %v950_v42 }
 0x1da   : > { %952 = vmatprep.subr.bf16.mxu0 %v1422_v38 }
 0x1dd   : > { %954 = vmatpush3.bf16.msra.mxu0 %v953_v45 }
 0x1de   : > { %955 = vmatprep.subr.bf16.mxu0 %v1422_v38 }
 0x1e1   : > { %957 = vmatpush3.bf16.msra.mxu0 %v956_v48 }
 0x1e2   : > { %958 = vmatprep.subr.bf16.mxu0 %v1422_v38 }
 0x1e5   : > { %960 = vmatpush3.bf16.msra.mxu0 %v959_v51 }
 0x1e6   : > { %961 = vmatprep.subr.bf16.mxu0 %v1422_v38 }
 0x1e9   : > { %963 = vmatpush3.bf16.msra.mxu0 %v962_v54 }
 0x1ea   : > { %964 = vmatprep.subr.bf16.mxu0 %v1422_v38 }
 0x1ed   : > { %966 = vmatpush3.bf16.msra.mxu0 %v965_v57 }
 0x1ee   : > { %967 = vmatprep.subr.bf16.mxu0 %v1422_v38 }
 0x1f1   : > { %969 = vmatpush3.bf16.msra.mxu0 %v968_v60 }
 0x1f4   : > { %920 = vmatmul.mubr.f32.vlgmr.msra.gmra.mrb[0].mxu0 %v524_v61 }
 0x2c7   : > { %v614_v63 = vpop.f32.mrb[0].mxu0 }
 0x2c8   : > { %v615_v0 = vadd.f32 %v809_v62, %v614_v63  ;;  %v921_v1 = vpop.f32.mrb[1].mxu0 }
 0x2ca   : > { %618 = vst [vmem:[%s386_s30] sm:$0xff] %v615_v0 }
 0x2cb PF: > { %s2053_s13 = sld [smem:[#allocation20_spill]]  ;;  %s638_s2 = sshll.u32 %s386_s30, 4  ;;  %s1889_s2 = int_to_ptr.vmem [resolvable:$true] %s638_s2 }
 0x2cc   : > { %s2055_s12 = sld [smem:[#allocation31_spill]]  ;;  %s620_s24 = scalar_lea.sflag [#allocation6], %s384_s7 }
 0x2cd   : > { %s1232_s21 = scalar_lea.vmem %s1889_s2, 128  ;;  %p2056_p12 = scmp.ne.s32.totalorder %s2029_s14, 0 }
 0x2ce   : > { %p1233_p13 = scmp.ne.s32.totalorder %s1889_s2, %s1232_s21  ;;  %s1425_s15 = smov [#allocation10]  }
 0x2cf   : > { %s1236_s30 = sshll.u32 %s1425_s15, 4  ;;  %s1237_s30 = int_to_ptr.vmem [resolvable:$false] %s1236_s30 }
 0x2d0   : > { %p1234_p2 = pnand %p1233_p13, %p2056_p12  ;;  %p1239_p3 = scmp.lt.s32.totalorder %s1889_s2, %s1237_s30 }
 0x2d1   : > { %s971_s28 = smul.u32 3, %s2053_s13 }
 0x2d2   : > { %p1235_p9 = pneg %p1234_p2 }
 0x2d3   : > { %s634_s16 = sadd.s32 %s971_s28, %s2093_s11  ;;  %s1238_s11 = scalar_lea.vmem %s1237_s30, 256 }
 0x2d4   : > { %s812_s1 = sshll.u32 %s634_s16, 7  ;;  %p1240_p8 = scmp.lt.s32.totalorder %s1238_s11, %s1232_s21 }
 0x2d5   : > { %s636_s26 = scalar_lea.hbm %s2055_s12, %s812_s1 }
 0x2d6   : > { %p1241_p4 = por %p1240_p8, %p1239_p3 }
 0x2d8   : > { %p1242_p11 = pnand %p1241_p4, %p1235_p9 }
 0x2da   : > { %1245 = shalt.err (!%p1242_p11)
}
 0x2db   : > { %s1246_s10 = scalar_lea.hbm %s636_s26, 128  ;;  %s1250_s13 = scalar_lea.hbm %s2055_s12, 1152 }
 0x2dc   : > { %p1247_p1 = scmp.ne.s32.totalorder %s636_s26, %s1246_s10  ;;  %p1251_p0 = scmp.lt.u32.totalorder %s636_s26, %s2055_s12 }
 0x2dd   : > { %p1252_p5 = scmp.lt.u32.totalorder %s1250_s13, %s1246_s10  ;;  %p1254_p13 = scmp.lt.u32.totalorder %s1246_s10, %s636_s26 }
 0x2de   : > { %p1248_p7 = pnand %p1247_p1, %p2056_p12 }
 0x2df   : > { %p1253_p6 = por %p1252_p5, %p1251_p0 }
 0x2e0   : > { %p1249_p10 = pneg %p1248_p7 }
 0x2e1   : > { %p1255_p2 = por %p1254_p13, %p1253_p6 }
 0x2e3   : > { %p1256_p9 = pnand %p1255_p2, %p1249_p10 }
 0x2e5   : > { %1259 = shalt.err (!%p1256_p9)
}
 0x2e6   : > { %978 = dma.vmem_to_hbm [thread:$0]  (%p2056_p12), %s1889_s2, 128, %s636_s26, %s620_s24  }
 0x2e7 PF: > { %s2057_s16 = sld [smem:[#allocation15_spill]]  ;;  %p995_p3 = scmp.ge.s32.totalorder %s1410_s9, 2 }
 0x2e8   : > { %p2058_p8 = scmp.ne.s32.totalorder %s2030_s6, 0 }
 0x2ea   : > { %p991_p4 = pnand %p995_p3, %p2058_p8 }
 0x2ed   : > { %s650_s1 = sand.u32 1, %s2057_s16  }
 0x2ee   : > { %s651_s17 = scalar_lea.sflag [#allocation6], %s650_s1 }
 0x2ef   : > { %1341 = dma.done.wait (!%p991_p4), %s651_s17, 128  }
 0x2f0   : > { %1343 = vsyncadd (!%p991_p4), %s651_s17, 4294967168  ;;  %s24_s9 = sadd.s32 1, %s1410_s9   ;;  %s2061_s18 = sld [smem:[#allocation16_spill]] }
 0x2f1   : > { %p1917_p11 = scmp.ge.s32.totalorder %s24_s9, 20   ;;  %s2062_s14 = smov %s1746_s19 }
 0x2f2   : > { %s2063_s2 = sld [smem:[#allocation17_spill]]  ;;  %s2064_s26 = sld [smem:[#allocation25_spill]] }
 0x2f3   : > { %s2065_s27 = sld [smem:[#allocation18_spill]]  ;;  %s2066_s6 = sld [smem:[#allocation26_spill]] }
 0x2f4   : > { %s2067_s30 = sld [smem:[#allocation21_spill]]  ;;  %s2068_s7 = sld [smem:[#allocation22_spill]] }
 0x2f5   : > { %s2069_s15 = sld [smem:[#allocation23_spill]]  ;;  %s2070_s19 = smov %s1354_s20 }
 0x2f6   : > { %s2072_s20 = smov %s1686_s4  ;;  %s2073_s21 = smov %s1362_s22 }
 0x2f7   : > { %s2074_s22 = smov %s1366_s23  ;;  %s2075_s23 = smov %s2062_s14 }
 0x2f8   : > { %s2076_s24 = smov %s1374_s25  ;;  %s2077_s25 = smov %s2063_s2 }
 0x2f9   : > { %s2078_s28 = smov %s1390_s29  ;;  %s2079_s29 = smov %s2066_s6 }
 0x2fa   : > { %s2080_s6 = smov %s1406_s8  ;;  %23 = sbr.rel (!%p1917_p11) target bundleno = 19 (0x13), region = 128 }
 0x2fb   : > { %s2081_s8 = smov %s2069_s15 }
 0x301   :  { %656 = vsyncpa [#allocation5], 1 }
 0x302   :  { %658 = vsyncpa [#allocation5 + $0x1], 1 }
 0x303   :  { %659 = vsyncpa [#allocation8], 1 }
 0x304   :  { %661 = vsyncpa [#allocation8 + $0x1], 1 }
 0x305   :  { %662 = vsyncpa [#allocation6], 1 }
 0x306   :  { %664 = vsyncpa [#allocation6 + $0x1], 1 }

</bundles_post_ra>
